<compile_context>
chip_gen: v7x
topology: tpu7x:2x2x1
jax: 0.10.0
libtpu: 0.0.40
codegen_flags: <defaults>
</compile_context>

<pallas_src>
import functools

import numpy as np

import jax
import jax.numpy as jnp
from jax.experimental import pallas as pl
from jax.experimental.pallas import tpu as pltpu


def _round_up(a, b):
    return (a + b - 1) // b * b


def _pool_neuron_delay_kernel(x_ref, s_ref, keep_ref, o_ref, *, kh, wpt, threshold):
    """Sum-pool + threshold spike + fused 1-step time delay for one row block.

    x_ref   : (bM, kh*Wp*T)   rows are (n, c, ho); lanes are (ih, wp, t)
    s_ref   : (Wp*T, Wo*T)    constant KW-pool selection matrix (x weight_scale)
    keep_ref: (1, Wo*T)       0 at every t == 0 lane, 1 elsewhere
    o_ref   : (bM, Wo*T)      lanes are (wo, t)
    """
    # synapse (pool), KH half: lane-slice adds at Wp*T-aligned offsets, streamed
    # straight from the ref (keeps live vregs to ~one slab).
    acc = x_ref[:, 0:wpt]
    for ih in range(1, kh):
        acc = acc + x_ref[:, ih * wpt:(ih + 1) * wpt]
    # synapse (pool), KW half + scalar pool weight: constant selection matmul on the
    # otherwise-idle MXU; stays lane-dense, handles any weight_scale sign.
    z = jnp.dot(acc, s_ref[...], preferred_element_type=jnp.float32)
    # neuron: memoryless threshold spike (see TODO at top).
    spike = (z >= threshold).astype(o_ref.dtype)
    # step_delay fused: out[..., t] = spike[..., t-1], out[..., 0] = 0.
    # One XLU roll (separate VLIW slot) + keep-mask multiply + one unmasked store.
    o_ref[...] = pltpu.roll(spike, shift=1, axis=1) * keep_ref[...]


def _pool_neuron_delay_count_kernel(x_ref, s_ref, keep_ref, o_ref, cnt_ref, *,
                                    kh, wpt, threshold):
    acc = x_ref[:, 0:wpt]
    for ih in range(1, kh):
        acc = acc + x_ref[:, ih * wpt:(ih + 1) * wpt]
    z = jnp.dot(acc, s_ref[...], preferred_element_type=jnp.float32)
    spike = (z >= threshold).astype(o_ref.dtype)
    delayed = pltpu.roll(spike, shift=1, axis=1) * keep_ref[...]
    o_ref[...] = delayed
    # Fused event count: spikes are {0,1}, so sum == count of (out > 0) in this block.
    # Replicated over an (8,128) tile so the count output stays (8,128)-conforming.
    cnt_ref[...] = jnp.broadcast_to(jnp.sum(delayed), cnt_ref.shape)


def _choose_block_rows(m, in_cols, out_cols, const_bytes, itemsize=4):
    """Pick a row-block (divisor of m) from the *padded* double-buffered footprint."""
    in_row = _round_up(in_cols, 128) * itemsize       # padded lane width, input
    out_row = _round_up(out_cols, 128) * itemsize     # padded lane width, output
    try:
        vmem_cap = int(pltpu.get_tpu_info().vmem_capacity_bytes)
    except Exception:
        vmem_cap = 128 * 1024 * 1024
    small_vmem = vmem_cap <= 64 * 1024 * 1024         # v7x-class parts (64 MiB VMEM)
    target_block = (3 << 20) if small_vmem else (6 << 20)
    vmem_limit = (48 << 20) if small_vmem else (64 << 20)

    per_row = 2 * (in_row + out_row)                  # double-buffered input + output
    fixed = 2 * const_bytes + (256 << 10)             # pool matrix + mask + slack
    cap = max(1, (target_block - min(fixed, target_block // 2)) // per_row)
    if m >= 4:
        cap = min(cap, m // 4)   # >= 4 grid steps -> >= 2 per TensorCore on v7x
    cap = max(1, min(cap, m))

    best = None
    for b in range(cap, 0, -1):                       # largest divisor <= cap,
        if m % b:                                     # preferring sublane-dense (x8)
            continue
        if best is None:
            best = b
        if b % 8 == 0:
            best = b
            break
    return best, vmem_limit


def abstract_pool_forward(x_nchwt, *, kernel_size, stride=None, padding=0,
                          weight_scale=1.0, threshold=0.1, count_log=False):
    """AbstractPool.forward.  x_nchwt : (N, C, H, W, T) float32."""
    N, C, H, W, T = x_nchwt.shape
    kh, kw = (kernel_size, kernel_size) if isinstance(kernel_size, int) else tuple(kernel_size)
    if stride is None:
        sh, sw = kh, kw
    else:
        sh, sw = (stride, stride) if isinstance(stride, int) else tuple(stride)
    ph, pw = (padding, padding) if isinstance(padding, int) else tuple(padding)
    assert (sh, sw) == (kh, kw), "only stride == kernel_size (module default) supported"

    x = x_nchwt.astype(jnp.float32)
    if ph or pw:   # only pay the pad pass when padding is actually requested
        x = jnp.pad(x, ((0, 0), (0, 0), (ph, ph), (pw, pw), (0, 0)))
    Hp, Wp = H + 2 * ph, W + 2 * pw
    assert Hp % kh == 0 and Wp % kw == 0, "padded spatial dims must tile by kernel_size"
    Ho, Wo = Hp // kh, Wp // kw

    M = N * C * Ho
    WpT = Wp * T
    WoT = Wo * T

    # Pure row-major reshape (no transpose pass): lanes are (ih, wp, t), minor dim
    # kh*Wp*T is lane-dense.
    x2d = x.reshape(M, kh * WpT)

    # Constant KW-pool selection matrix (scaled by the pool weight): z = (sum_kh x) @ S.
    s_np = np.zeros((WpT, WoT), np.float32)
    eye = np.eye(T, dtype=np.float32) * float(weight_scale)
    for wp in range(Wp):
        wo = wp // kw
        s_np[wp * T:(wp + 1) * T, wo * T:(wo + 1) * T] += eye
    s = jnp.asarray(s_np)

    # Keep-mask for the fused 1-step delay (zero every t == 0 lane).
    keep_np = np.ones((1, WoT), np.float32)
    keep_np[:, ::T] = 0.0
    keep = jnp.asarray(keep_np)

    const_bytes = _round_up(WpT, 8) * _round_up(WoT, 128) * 4
    bM, vmem_limit = _choose_block_rows(M, kh * WpT, WoT, const_bytes)
    grid = (M // bM,)

    in_specs = [
        pl.BlockSpec((bM, kh * WpT), lambda i: (i, 0)),
        pl.BlockSpec((WpT, WoT), lambda i: (0, 0)),
        pl.BlockSpec((1, WoT), lambda i: (0, 0)),
    ]
    out_spec = pl.BlockSpec((bM, WoT), lambda i: (i, 0))
    cparams = pltpu.CompilerParams(dimension_semantics=("parallel",),
                                   vmem_limit_bytes=vmem_limit)

    if count_log:
        kern = functools.partial(_pool_neuron_delay_count_kernel, kh=kh, wpt=WpT,
                                 threshold=float(threshold))
        out2d, counts = pl.pallas_call(
            kern,
            out_shape=(jax.ShapeDtypeStruct((M, WoT), jnp.float32),
                       jax.ShapeDtypeStruct((grid[0] * 8, 128), jnp.float32)),
            grid_spec=pltpu.PrefetchScalarGridSpec(
                num_scalar_prefetch=0, grid=grid,
                in_specs=in_specs,
                out_specs=(out_spec, pl.BlockSpec((8, 128), lambda i: (i, 0))),
            ),
            compiler_params=cparams,
        )(x2d, s, keep)
        out = out2d.reshape(N, C, Ho, Wo, T)   # free reshape back to NCHWT
        # Each block replicated its spike count over an (8, 128) tile.
        rate = jnp.sum(counts) / (8.0 * 128.0) / float(out2d.size)
        return out, rate

    kern = functools.partial(_pool_neuron_delay_kernel, kh=kh, wpt=WpT,
                             threshold=float(threshold))
    out2d = pl.pallas_call(
        kern,
        out_shape=jax.ShapeDtypeStruct((M, WoT), jnp.float32),
        grid_spec=pltpu.PrefetchScalarGridSpec(
            num_scalar_prefetch=0, grid=grid,
            in_specs=in_specs,
            out_specs=out_spec,
        ),
        compiler_params=cparams,
    )(x2d, s, keep)
    return out2d.reshape(N, C, Ho, Wo, T)      # free reshape back to NCHWT


if __name__ == "__main__":
    key = jax.random.PRNGKey(0)

    # Small NCHWT shapes implied by the module; T=16 keeps both kernel block minor
    # dims (kh*W*T = 512, Wo*T = 128) lane-dense.
    N, C, H, W, T = 2, 4, 16, 16, 16
    kernel_size = 2
    weight_scale = 0.5
    threshold = 1.0      # ~50% spike rate for sums of 4 U(0,1) scaled by 0.5

    x = jax.random.uniform(key, (N, C, H, W, T), dtype=jnp.float32)

    y = abstract_pool_forward(x, kernel_size=kernel_size, stride=None, padding=0,
                              weight_scale=weight_scale, threshold=threshold)
    jax.block_until_ready(y)
    Ho, Wo = H // kernel_size, W // kernel_size
    assert y.shape == (N, C, Ho, Wo, T)

    # Pure-JAX reference of the same semantics (sum-pool -> threshold -> 1-step delay).
    ref_z = weight_scale * x.reshape(N, C, Ho, kernel_size, Wo, kernel_size, T).sum(axis=(3, 5))
    ref_s = (ref_z >= threshold).astype(jnp.float32)
    ref = jnp.concatenate([jnp.zeros_like(ref_s[..., :1]), ref_s[..., :-1]], axis=-1)
    err = float(jnp.mean(jnp.abs(y - ref)))
    assert err < 1e-3, f"mismatch vs reference: {err}"

    # count_log path (fused in-kernel spike count).
    y2, rate = abstract_pool_forward(x, kernel_size=kernel_size, stride=None, padding=0,
                                     weight_scale=weight_scale, threshold=threshold,
                                     count_log=True)
    jax.block_until_ready((y2, rate))
    err2 = float(jnp.mean(jnp.abs(y2 - ref)))
    ref_rate = float(jnp.mean((ref > 0).astype(jnp.float32)))
    assert err2 < 1e-3, f"mismatch vs reference (count_log): {err2}"
    assert abs(float(rate) - ref_rate) < 1e-3, f"rate mismatch: {float(rate)} vs {ref_rate}"

    print("KERNEL_OK")
</pallas_src>

<mosaic_0001>
module attributes {stable_mosaic.version = 11 : i64} {
  func.func @_pool_neuron_delay_kernel(%arg0: i32, %arg1: memref<16x512xf32, #tpu.memory_space<vmem>>, %arg2: memref<256x128xf32, #tpu.memory_space<vmem>>, %arg3: memref<1x128xf32, #tpu.memory_space<vmem>>, %arg4: memref<16x128xf32, #tpu.memory_space<vmem>>) attributes {dimension_semantics = [#tpu.dimension_semantics<parallel>], iteration_bounds = array<i64: 4>, scalar_prefetch = 0 : i64, scratch_operands = 0 : i64, tpu.core_type = #tpu.core_type<tc>, window_params = [{transform_indices = @transform_0, window_bounds = array<i64: 16, 512>}, {pipeline_mode = #tpu.pipeline_mode<synchronous>, transform_indices = @transform_1, window_bounds = array<i64: 256, 128>}, {pipeline_mode = #tpu.pipeline_mode<synchronous>, transform_indices = @transform_2, window_bounds = array<i64: 1, 128>}, {transform_indices = @transform_3, window_bounds = array<i64: 16, 128>}]} {
    %c0 = arith.constant 0 : index
    %c0_0 = arith.constant 0 : index
    %0 = vector.load %arg1[%c0, %c0_0] : memref<16x512xf32, #tpu.memory_space<vmem>>, vector<16x256xf32>
    %c0_1 = arith.constant 0 : index
    %c256 = arith.constant 256 : index
    %1 = vector.load %arg1[%c0_1, %c256] : memref<16x512xf32, #tpu.memory_space<vmem>>, vector<16x256xf32>
    %2 = arith.addf %0, %1 : vector<16x256xf32>
    %c0_2 = arith.constant 0 : index
    %c0_3 = arith.constant 0 : index
    %3 = vector.load %arg2[%c0_2, %c0_3] : memref<256x128xf32, #tpu.memory_space<vmem>>, vector<256x128xf32>
    %cst = arith.constant dense<0.000000e+00> : vector<16x128xf32>
    %4 = tpu.matmul %2, %3, %cst {dimension_numbers = #tpu.dot_dimension_numbers<[1], [0], [0], [1], [0, 0, 1, 1], [], []>} : vector<16x256xf32>, vector<256x128xf32>, vector<16x128xf32> -> vector<16x128xf32>
    %cst_4 = arith.constant 1.000000e+00 : f32
    %5 = vector.broadcast %cst_4 : f32 to vector<16x128xf32>
    %6 = arith.cmpf oge, %4, %5 : vector<16x128xf32>
    %7 = arith.extui %6 : vector<16x128xi1> to vector<16x128xi32>
    %8 = arith.sitofp %7 : vector<16x128xi32> to vector<16x128xf32>
    %c1_i32 = arith.constant 1 : i32
    %9 = tpu.dynamic_rotate %8 by %c1_i32 dim 1 : vector<16x128xf32>, i32 -> vector<16x128xf32>
    %c0_5 = arith.constant 0 : index
    %c0_6 = arith.constant 0 : index
    %10 = vector.load %arg3[%c0_5, %c0_6] : memref<1x128xf32, #tpu.memory_space<vmem>>, vector<1x128xf32>
    %11 = vector.broadcast %10 : vector<1x128xf32> to vector<16x128xf32>
    %12 = arith.mulf %9, %11 : vector<16x128xf32>
    %c0_7 = arith.constant 0 : index
    %c0_8 = arith.constant 0 : index
    %13 = vector.load %arg4[%c0_7, %c0_8] : memref<16x128xf32, #tpu.memory_space<vmem>>, vector<16x128xf32>
    tpu.vector_store %arg4[%c0_7, %c0_8], %12 {strides = array<i32>} : memref<16x128xf32, #tpu.memory_space<vmem>>, vector<16x128xf32>,
    return
  }
  func.func @transform_0(%arg0: i32) -> (i32, i32) {
    %c0_i32 = arith.constant 0 : i32
    %c0_i32_0 = arith.constant 0 : i32
    return %arg0, %c0_i32 : i32, i32
  }
  func.func @transform_1(%arg0: i32) -> (i32, i32) {
    %c0_i32 = arith.constant 0 : i32
    %c0_i32_0 = arith.constant 0 : i32
    %c0_i32_1 = arith.constant 0 : i32
    return %c0_i32, %c0_i32_0 : i32, i32
  }
  func.func @transform_2(%arg0: i32) -> (i32, i32) {
    %c0_i32 = arith.constant 0 : i32
    %c0_i32_0 = arith.constant 0 : i32
    %c0_i32_1 = arith.constant 0 : i32
    return %c0_i32, %c0_i32_0 : i32, i32
  }
  func.func @transform_3(%arg0: i32) -> (i32, i32) {
    %c0_i32 = arith.constant 0 : i32
    %c0_i32_0 = arith.constant 0 : i32
    return %arg0, %c0_i32 : i32, i32
  }
}

</mosaic_0001>

<bundles_post_ra>
// kernel: tpu_custom_call.1
= control target key start
LH: loop header
LB: loop body
LE: loop exit
PB: predicated region body
PF: predicated region fallthrough
CT: control target
= control target key end

     0   :  { %8 = vsyncpa [#allocation3], 0  ;;  %s1083_s0 = inlined_call_operand.hbm [shape: f32[64,512], index: 0, kind: input, shape index: {}]   ;;  %s1084_s1 = inlined_call_operand.hbm [shape: f32[256,128], index: 1, kind: input, shape index: {}]   ;;  %s1085_s2 = inlined_call_operand.hbm [shape: f32[1,128], index: 2, kind: input, shape index: {}]   ;;  %s1086_s3 = inlined_call_operand.hbm [shape: f32[64,128], index: 3, kind: output, shape index: {}]  }
   0x1   :  { %10 = vsyncpa [#allocation3 + $0x1], 0 }
   0x2   :  { %11 = vsyncpa [#allocation6], 0 }
   0x3   :  { %12 = vsyncpa [#allocation4], 0 }
   0x4   :  { %14 = vsyncpa [#allocation4 + $0x1], 0  ;;  %s846_s12 = smov 0   ;;  %s848_s13 = smov 0  }
   0x5   :  { %s850_s14 = smov 0   ;;  %s852_s15 = smov 0  }
   0x6 LB: > { %s867_s16 = sadd.s32 4294967295, %s812_s15   ;;  %s465_s17 = sadd.s32 4294967294, %s812_s15   ;;  %s812_s15 = sphi %s852_s15, %s1105_s15   ;;  %s808_s14 = sphi %s850_s14, %s1104_s14   ;;  %s804_s13 = sphi %s848_s13, %s1103_s13   ;;  %s800_s12 = sphi %s846_s12, %s1102_s12  }
   0x7   : > { %p40_p0 = scmp.ne.s32.totalorder %s804_s13, %s800_s12  ;;  %p1087_p1 = scmp.eq.s32.totalorder %s867_s16, 0 }
   0x8   : > { %p112_p3 = scmp.eq.s32.totalorder %s465_s17, 3  ;;  %p466_p5 = scmp.ge.s32.totalorder %s812_s15, 1 }
   0x9   : > { %p876_p4 = por %p1087_p1, %p40_p0  ;;  %p119_p7 = scmp.lt.s32.totalorder %s812_s15, 5 }
   0xa   : > { %p881_p6 = por %p112_p3, %p40_p0  ;;  %s814_s21 = smov [#allocation5]  }
   0xb   : > { %s1090_s18 = scalar_select %p876_p4, 1, 0 }
   0xc   : > { %s1091_s19 = scalar_select %p881_p6, 1, 0 }
   0xd   : > { %p886_p8 = pnand %p466_p5, %p119_p7  ;;  %s131_s22 = sshll.u32 %s814_s21, 4  ;;  %s132_s22 = int_to_ptr.vmem [resolvable:$true] %s131_s22 }
   0xe   : > { %s815_s24 = smov [#allocation7]   ;;  %s656_s28 = scalar_lea.hbm %s1084_s1, 4096 }
   0xf   : > { %s1092_s20 = scalar_select %p886_p8, 1, 0 }
  0x10   : > { %p588_p9 = pneg %p886_p8  ;;  %s145_s25 = sshll.u32 %s815_s24, 4  ;;  %s898_s25 = int_to_ptr.vmem [resolvable:$true] %s145_s25 }
  0x11   : > { %p657_p11 = scmp.ne.s32.totalorder %s1084_s1, %s656_s28  ;;  %p663_p3 = scmp.lt.u32.totalorder %s656_s28, %s1084_s1 }
  0x12   : > { %p894_p10 = pnand %p588_p9, %p1087_p1 }
  0x14   : > { %p658_p12 = pneg %p894_p10 }
  0x16   : > { %p659_p13 = pnand %p658_p12, %p657_p11 }
  0x18   : > { %p660_p0 = pneg %p659_p13 }
  0x1a   : > { %p665_p5 = pnand %p663_p3, %p660_p0 }
  0x1c   : > { %668 = shalt.err (!%p665_p5)
}
  0x1d   : > { %s669_s6 = scalar_lea.vmem %s132_s22, 4096  ;;  %p677_p2 = scmp.lt.s32.totalorder %s132_s22, %s132_s22 }
  0x1e   : > { %p670_p7 = scmp.ne.s32.totalorder %s132_s22, %s669_s6  ;;  %p678_p6 = scmp.lt.s32.totalorder %s669_s6, %s669_s6 }
  0x20   : > { %p672_p9 = pnand %p670_p7, %p658_p12  ;;  %p679_p4 = por %p678_p6, %p677_p2 }
  0x22   : > { %p673_p1 = pneg %p672_p9 }
  0x24   : > { %p680_p8 = pnand %p679_p4, %p673_p1 }
  0x26   : > { %683 = shalt.err (!%p680_p8)
}
  0x27   : > { %s816_s7 = smov 128   ;;  %s817_s8 = smov 8  }
  0x28   : > { %591 = dma.hbm_to_vmem [thread:$0]  (!%p894_p10), %s1084_s1, 4096, %s132_s22, [#allocation6], %s816_s7, %s816_s7, %s817_s8  }
  0x29   : > { %s684_s21 = scalar_lea.hbm %s1085_s2, 16 }
  0x2a   : > { %p685_p11 = scmp.ne.s32.totalorder %s1085_s2, %s684_s21  ;;  %p691_p4 = scmp.lt.u32.totalorder %s684_s21, %s1085_s2 }
  0x2c   : > { %p687_p1 = pnand %p685_p11, %p658_p12 }
  0x2e   : > { %p688_p2 = pneg %p687_p1 }
  0x30   : > { %p693_p6 = pnand %p691_p4, %p688_p2 }
  0x32   : > { %696 = shalt.err (!%p693_p6)
}
  0x33   : > { %s697_s22 = scalar_lea.vmem %s898_s25, 16  ;;  %s704_s29 = scalar_lea.vmem %s898_s25, 32 }
  0x34   : > { %p698_p8 = scmp.ne.s32.totalorder %s898_s25, %s697_s22  ;;  %p705_p3 = scmp.lt.s32.totalorder %s898_s25, %s898_s25 }
  0x35   : > { %p706_p5 = scmp.lt.s32.totalorder %s704_s29, %s697_s22 }
  0x36   : > { %p700_p13 = pnand %p698_p8, %p658_p12 }
  0x37   : > { %p707_p7 = por %p706_p5, %p705_p3 }
  0x38   : > { %p701_p0 = pneg %p700_p13 }
  0x3a   : > { %p708_p9 = pnand %p707_p7, %p701_p0 }
  0x3c   : > { %711 = shalt.err (!%p708_p9)
}
  0x3d   : > { %594 = dma.hbm_to_vmem [thread:$0]  (!%p894_p10), %s1085_s2, 16, %s898_s25, [#allocation6]  }
  0x3e   : > { %s949_s5 = sadd.s32 1, %s812_s15   ;;  %s27_s23 = sadd.s32 1, %s808_s14 }
  0x3f   : > { %s24_s6 = ssub.s32 %s812_s15, %s949_s5  ;;  %p34_p12 = scmp.ne.s32.totalorder %s808_s14, %s804_s13 }
  0x40   : > { %p25_p11 = scmp.eq.s32.totalorder %s24_s6, 0  ;;  %p35_p1 = scmp.eq.s32.totalorder %s812_s15, 0 }
  0x41   : > { %p1094_p2 = scmp.eq.s32.totalorder %s867_s16, 3  ;;  %p605_p6 = scmp.lt.s32.totalorder %s812_s15, 4 }
  0x42   : > { %s965_s8 = scalar_select %p25_p11, %s808_s14, %s27_s23  }
  0x43   : > { %p959_p4 = por %p1094_p2, %p34_p12  ;;  %p36_p8 = por %p35_p1, %p34_p12 }
  0x44   : > { %s156_s9 = sand.u32 1, %s808_s14   ;;  %s488_s25 = sshll.u32 %s812_s15, 10 }
  0x45   : > { %s470_s10 = sshll.u32 %s156_s9, 6  ;;  %s972_s21 = scalar_lea.hbm %s1083_s0, %s488_s25 }
  0x46   : > { %s160_s24 = scalar_lea.vmem [#allocation2], %s470_s10  ;;  %p976_p10 = pnand %p605_p6, %p36_p8 }
  0x47   : > { %s168_s26 = sshll.u32 %s160_s24, 4  ;;  %s980_s28 = scalar_lea.sflag [#allocation3], %s156_s9  ;;  %s974_s26 = int_to_ptr.vmem [resolvable:$true] %s168_s26 }
  0x48   : > { %s712_s22 = scalar_lea.hbm %s972_s21, 1024  ;;  %p714_p0 = pneg %p976_p10 }
  0x49   : > { %p713_p13 = scmp.ne.s32.totalorder %s972_s21, %s712_s22  ;;  %s717_s4 = scalar_lea.hbm %s1083_s0, 4096 }
  0x4a   : > { %p718_p7 = scmp.lt.u32.totalorder %s972_s21, %s1083_s0  ;;  %p719_p9 = scmp.lt.u32.totalorder %s717_s4, %s712_s22 }
  0x4b   : > { %p715_p3 = pnand %p714_p0, %p713_p13  ;;  %p721_p11 = scmp.lt.u32.totalorder %s712_s22, %s972_s21 }
  0x4c   : > { %p720_p12 = por %p719_p9, %p718_p7 }
  0x4d   : > { %p716_p5 = pneg %p715_p3 }
  0x4e   : > { %p722_p1 = por %p721_p11, %p720_p12 }
  0x50   : > { %p723_p2 = pnand %p722_p1, %p716_p5 }
  0x52   : > { %726 = shalt.err (!%p723_p2)
}
  0x53   : > { %s727_s9 = scalar_lea.vmem %s974_s26, 1024  ;;  %s818_s10 = smov [#allocation2]  }
  0x54   : > { %p728_p6 = scmp.ne.s32.totalorder %s974_s26, %s727_s9  ;;  %s732_s25 = sshll.u32 %s818_s10, 4  ;;  %s733_s25 = int_to_ptr.vmem [resolvable:$false] %s732_s25 }
  0x55   : > { %s734_s11 = scalar_lea.vmem %s733_s25, 2048  ;;  %p735_p3 = scmp.lt.s32.totalorder %s974_s26, %s733_s25 }
  0x56   : > { %p730_p8 = pnand %p728_p6, %p714_p0  ;;  %p736_p7 = scmp.lt.s32.totalorder %s734_s11, %s727_s9 }
  0x58   : > { %p731_p13 = pneg %p730_p8  ;;  %p737_p9 = por %p736_p7, %p735_p3 }
  0x5a   : > { %p738_p12 = pnand %p737_p9, %p731_p13 }
  0x5c   : > { %741 = shalt.err (!%p738_p12)
}
  0x5d   : > { %s819_s17 = smov 512   ;;  %s820_s24 = smov 32  }
  0x5e   : > { %598 = dma.hbm_to_vmem [thread:$0]  (!%p976_p10), %s972_s21, 1024, %s974_s26, %s980_s28, %s819_s17, %s819_s17, %s820_s24  }
  0x5f   : > { %p1097_p0 = scmp.ne.s32.totalorder %s1092_s20, 0 }
  0x60   : > { %s1011_s22 = sand.u32 (!%p1097_p0), 1, %s804_s13   ;;  %p1098_p5 = scmp.ne.s32.totalorder (!%p1097_p0), %s1090_s18, 0 }
  0x61   : > { %180 = sbr.rel (%p1097_p0) target bundleno = 496 (0x1f0), region = 32  ;;  %s475_s29 = sshll.u32 (!%p1097_p0), %s1011_s22, 6 }
  0x62   : > { %s183_s30 = scalar_lea.sflag (!%p1097_p0), [#allocation3], %s1011_s22  ;;  %s1015_s4 = scalar_lea.vmem (!%p1097_p0), [#allocation2], %s475_s29 }
  0x68   : > { %787 = dma.done.wait (%p1098_p5), %s183_s30, 1024  }
  0x69   : > { %789 = vsyncadd (%p1098_p5), %s183_s30, 4294966272  ;;  %p1099_p10 = scmp.eq.s32.totalorder %s867_s16, 0 }
  0x6b   : > { %791 = dma.done.wait (%p1099_p10), [#allocation6], 4112   ;;  %p1100_p11 = pmov %p1099_p10 }
  0x6c   : > { %v247_v0 = vld [vmem:[#allocation5 + $0x80] sm:$0xff]  ;;  %v248_v1 = vld [vmem:[#allocation5 + $0x88] sm:$0xff]  ;;  %v249_v5 = vld [vmem:[#allocation5 + $0x90] sm:$0xff]  ;;  %s822_s18 = smov 1   ;;  %s478_s20 = sshll.u32 %s1011_s22, 4 }
  0x6d   : > { %793 = vsyncadd (%p1100_p11), [#allocation6], 4294963184  ;;  %v231_v2 = vld [vmem:[#allocation5] sm:$0xff]  ;;  %v528_v3 = vpack.c.bf16 %v248_v1, %v247_v0  ;;  %v232_v4 = vld [vmem:[#allocation5 + $0x8] sm:$0xff]  ;;  %s216_s21 = scalar_lea.vmem [#allocation8], %s478_s20  ;;  %s489_s27 = sshll.u32 %s867_s16, 8 }
  0x6e   : > { %v250_v6 = vld [vmem:[#allocation5 + $0x98] sm:$0xff]  ;;  %v530_v7 = vpack.c.bf16 %v232_v4, %v231_v2  ;;  %v233_v9 = vld [vmem:[#allocation5 + $0x10] sm:$0xff]  ;;  %v251_v11 = vld [vmem:[#allocation5 + $0xa0] sm:$0xff]  ;;  %v821_v2 = vmov 0.0   ;;  %s373_s26 = sshll.u32 %s216_s21, 4  ;;  %s1040_s6 = scalar_lea.hbm %s1086_s3, %s489_s27  ;;  %s1035_s26 = int_to_ptr.vmem [resolvable:$true] %s373_s26 }
  0x6f   : > { %v532_v8 = vpack.c.bf16 %v250_v6, %v249_v5  ;;  %v234_v10 = vld [vmem:[#allocation5 + $0x18] sm:$0xff]  ;;  %529 = vmatprep.subr.bf16.mxu0 %v528_v3  ;;  %560 = vmatprep.subr.bf16.mxu1 %v528_v3  ;;  %v252_v12 = vld [vmem:[#allocation5 + $0xa8] sm:$0xff]  ;;  %v235_v15 = vld [vmem:[#allocation5 + $0x20] sm:$0xff]  ;;  %s360_s9 = scalar_lea.sflag [#allocation4], %s1011_s22  ;;  %s742_s16 = scalar_lea.vmem %s1035_s26, 256 }
  0x70   : > { %531 = vmatpush3.bf16.msra.mxu0 %v530_v7  ;;  %568 = vmatpush3.bf16.msra.mxu1 %v530_v7  ;;  %v534_v13 = vpack.c.bf16 %v234_v10, %v233_v9  ;;  %v536_v14 = vpack.c.bf16 %v252_v12, %v251_v11  ;;  %v236_v16 = vld [vmem:[#allocation5 + $0x28] sm:$0xff]  ;;  %v253_v17 = vld [vmem:[#allocation5 + $0xb0] sm:$0xff]  ;;  %v254_v18 = vld [vmem:[#allocation5 + $0xb8] sm:$0xff]  ;;  %p743_p1 = scmp.ne.s32.totalorder %s1035_s26, %s742_s16  ;;  %s823_s10 = smov [#allocation8]  }
  0x71   : > { %533 = vmatprep.subr.bf16.mxu0 %v532_v8  ;;  %561 = vmatprep.subr.bf16.mxu1 %v532_v8  ;;  %v538_v19 = vpack.c.bf16 %v236_v16, %v235_v15  ;;  %v540_v20 = vpack.c.bf16 %v254_v18, %v253_v17  ;;  %v237_v21 = vld [vmem:[#allocation5 + $0x30] sm:$0xff]  ;;  %v238_v22 = vld [vmem:[#allocation5 + $0x38] sm:$0xff]  ;;  %v255_v23 = vld [vmem:[#allocation5 + $0xc0] sm:$0xff]  ;;  %s746_s25 = sshll.u32 %s823_s10, 4  ;;  %s747_s25 = int_to_ptr.vmem [resolvable:$false] %s746_s25 }
  0x72   : > { %v256_v24 = vld [vmem:[#allocation5 + $0xc8] sm:$0xff]  ;;  %v224_v26 = vld [vmem:[%s1015_s4 + $0x18] sm:$0xff]  ;;  %v542_v29 = vpack.c.bf16 %v238_v22, %v237_v21  ;;  %v239_v33 = vld [vmem:[#allocation5 + $0x40] sm:$0xff]  ;;  %p744_p2 = pnand %p743_p1, %p959_p4  ;;  %s748_s11 = scalar_lea.vmem %s747_s25, 512 }
  0x73   : > { %v220_v25 = vld [vmem:[%s1015_s4 + $0x8] sm:$0xff]  ;;  %v226_v28 = vld [vmem:[%s1015_s4 + $0x38] sm:$0xff]  ;;  %v544_v32 = vpack.c.bf16 %v256_v24, %v255_v23  ;;  %v257_v35 = vld [vmem:[#allocation5 + $0xd0] sm:$0xff]  ;;  %p749_p8 = scmp.lt.s32.totalorder %s1035_s26, %s747_s25  ;;  %p750_p13 = scmp.lt.s32.totalorder %s748_s11, %s742_s16 }
  0x74   : > { %535 = vmatpush3.bf16.msra.mxu0 %v534_v13  ;;  %569 = vmatpush3.bf16.msra.mxu1 %v534_v13  ;;  %v222_v27 = vld [vmem:[%s1015_s4 + $0x28] sm:$0xff]  ;;  %v228_v30 = vadd.f32 %v224_v26, %v220_v25  ;;  %v258_v36 = vld [vmem:[#allocation5 + $0xd8] sm:$0xff]  ;;  %v241_v39 = vld [vmem:[#allocation5 + $0x50] sm:$0xff]  ;;  %p745_p6 = pneg %p744_p2 }
  0x75   : > { %537 = vmatprep.subr.bf16.mxu0 %v536_v14  ;;  %562 = vmatprep.subr.bf16.mxu1 %v536_v14  ;;  %v230_v31 = vadd.f32 %v226_v28, %v222_v27  ;;  %v240_v34 = vld [vmem:[#allocation5 + $0x48] sm:$0xff]  ;;  %v548_v38 = vpack.c.bf16 %v258_v36, %v257_v35  ;;  %v242_v40 = vld [vmem:[#allocation5 + $0x58] sm:$0xff]  ;;  %v259_v41 = vld [vmem:[#allocation5 + $0xe0] sm:$0xff]  ;;  %p751_p3 = por %p750_p13, %p749_p8 }
  0x76   : > { %327 = vmatprep.mubr.f32.mxu0 %v228_v30  ;;  %v546_v37 = vpack.c.bf16 %v240_v34, %v239_v33  ;;  %v260_v42 = vld [vmem:[#allocation5 + $0xe8] sm:$0xff]  ;;  %v550_v43 = vpack.c.bf16 %v242_v40, %v241_v39  ;;  %v243_v45 = vld [vmem:[#allocation5 + $0x60] sm:$0xff]  ;;  %v261_v47 = vld [vmem:[#allocation5 + $0xf0] sm:$0xff] }
  0x77   : > { %332 = vmatprep.mubr.f32.mxu1 %v230_v31  ;;  %v552_v44 = vpack.c.bf16 %v260_v42, %v259_v41  ;;  %v244_v46 = vld [vmem:[#allocation5 + $0x68] sm:$0xff]  ;;  %v262_v48 = vld [vmem:[#allocation5 + $0xf8] sm:$0xff]  ;;  %v245_v51 = vld [vmem:[#allocation5 + $0x70] sm:$0xff]  ;;  %p752_p7 = pnand %p751_p3, %p745_p6 }
  0x78   : > { %539 = vmatpush3.bf16.msra.mxu0 %v538_v19  ;;  %570 = vmatpush3.bf16.msra.mxu1 %v538_v19  ;;  %v554_v49 = vpack.c.bf16 %v244_v46, %v243_v45  ;;  %v556_v50 = vpack.c.bf16 %v262_v48, %v261_v47  ;;  %v246_v52 = vld [vmem:[#allocation5 + $0x78] sm:$0xff]  ;;  %v219_v53 = vld [vmem:[%s1015_s4] sm:$0xff]  ;;  %v223_v55 = vld [vmem:[%s1015_s4 + $0x10] sm:$0xff] }
  0x79   : > { %541 = vmatprep.subr.bf16.mxu0 %v540_v20  ;;  %563 = vmatprep.subr.bf16.mxu1 %v540_v20  ;;  %v558_v54 = vpack.c.bf16 %v246_v52, %v245_v51  ;;  %v221_v56 = vld [vmem:[%s1015_s4 + $0x20] sm:$0xff]  ;;  %v225_v57 = vld [vmem:[%s1015_s4 + $0x30] sm:$0xff]  ;;  %v227_v58 = vadd.f32 %v223_v55, %v219_v53 }
  0x7a   : > { %v229_v59 = vadd.f32 %v225_v57, %v221_v56  ;;  %v481_v6 = vld [vmem:[#allocation7] ss:$0 sm:$0xff] }
  0x7c   : > { %543 = vmatpush3.bf16.msra.mxu0 %v542_v29  ;;  %571 = vmatpush3.bf16.msra.mxu1 %v542_v29 }
  0x7d   : > { %545 = vmatprep.subr.bf16.mxu0 %v544_v32  ;;  %564 = vmatprep.subr.bf16.mxu1 %v544_v32 }
  0x80   : > { %547 = vmatpush3.bf16.msra.mxu0 %v546_v37  ;;  %572 = vmatpush3.bf16.msra.mxu1 %v546_v37 }
  0x81   : > { %549 = vmatprep.subr.bf16.mxu0 %v548_v38  ;;  %565 = vmatprep.subr.bf16.mxu1 %v548_v38 }
  0x84   : > { %551 = vmatpush3.bf16.msra.mxu0 %v550_v43  ;;  %573 = vmatpush3.bf16.msra.mxu1 %v550_v43 }
  0x85   : > { %553 = vmatprep.subr.bf16.mxu0 %v552_v44  ;;  %566 = vmatprep.subr.bf16.mxu1 %v552_v44 }
  0x88   : > { %555 = vmatpush3.bf16.msra.mxu0 %v554_v49  ;;  %574 = vmatpush3.bf16.msra.mxu1 %v554_v49 }
  0x89   : > { %557 = vmatprep.subr.bf16.mxu0 %v556_v50  ;;  %567 = vmatprep.subr.bf16.mxu1 %v556_v50 }
  0x8c   : > { %559 = vmatpush3.bf16.msra.mxu0 %v558_v54  ;;  %575 = vmatpush3.bf16.msra.mxu1 %v558_v54 }
  0x8f   : > { %328 = vmatmul.mubr.f32.vlgmr.msra.gmra.mrb[0].mxu0 %v227_v58  ;;  %333 = vmatmul.mubr.f32.vlgmr.msra.gmra.mrb[0].mxu1 %v229_v59 }
 0x162   : > { %v522_v60 = vpop.f32.mrb[0].mxu0  ;;  %v525_v61 = vpop.f32.mrb[0].mxu1 }
 0x163   : > { %v523_v62 = vpop.f32.mrb[1].mxu0  ;;  %v526_v63 = vpop.f32.mrb[1].mxu1 }
 0x164   : > { %v524_v0 = vadd.f32 %v523_v62, %v522_v60  ;;  %v527_v1 = vadd.f32 %v526_v63, %v525_v61 }
 0x166   : > { %vm338_vm0 = vcmp.ge.f32.partialorder %v524_v0, 1.0  ;;  %vm339_vm1 = vcmp.ge.f32.partialorder %v527_v1, 1.0 }
 0x167   : > { %v479_v3 = vsel %vm338_vm0, 1.0, %v821_v2  ;;  %v480_v4 = vsel %vm339_vm1, 1.0, %v821_v2 }
 0x168   : > { %v651_v5 = vpack.i.bf16 %v480_v4, %v479_v3 }
 0x16a   : > { %652 = vrot.lane.b32.xlu0 %v651_v5, %s822_s18 }
 0x1dc   : > { %v653_v7 = vpop.permute.xlu0 %652 }
 0x1dd   : > { %v655_v8 = vunpack.i.h.bf16 %v653_v7  ;;  %v654_v9 = vunpack.i.l.bf16 %v653_v7 }
 0x1df   : > { %v356_v10 = vmul.f32 %v655_v8, %v481_v6  ;;  %v355_v11 = vmul.f32 %v654_v9, %v481_v6 }
 0x1e1   : > { %358 = vst [vmem:[%s216_s21 + $0x8] sm:$0xff] %v356_v10  ;;  %357 = vst [vmem:[%s216_s21] sm:$0xff] %v355_v11 }
 0x1e2   : > { %755 = shalt.err (!%p752_p7)
}
 0x1e3   : > { %s756_s17 = scalar_lea.hbm %s1040_s6, 256  ;;  %s760_s30 = scalar_lea.hbm %s1086_s3, 1024 }
 0x1e4   : > { %p757_p9 = scmp.ne.s32.totalorder %s1040_s6, %s756_s17  ;;  %p761_p5 = scmp.lt.u32.totalorder %s1040_s6, %s1086_s3 }
 0x1e5   : > { %p762_p10 = scmp.lt.u32.totalorder %s760_s30, %s756_s17  ;;  %p764_p1 = scmp.lt.u32.totalorder %s756_s17, %s1040_s6 }
 0x1e6   : > { %p758_p12 = pnand %p757_p9, %p959_p4 }
 0x1e7   : > { %p763_p11 = por %p762_p10, %p761_p5 }
 0x1e8   : > { %p759_p0 = pneg %p758_p12 }
 0x1e9   : > { %p765_p2 = por %p764_p1, %p763_p11 }
 0x1eb   : > { %p766_p6 = pnand %p765_p2, %p759_p0 }
 0x1ed   : > { %769 = shalt.err (!%p766_p6)
}
 0x1ee   : > { %s824_s20 = smov 128   ;;  %s825_s21 = smov 8  }
 0x1ef   : > { %586 = dma.vmem_to_hbm [thread:$0]  (%p959_p4), %s1035_s26, 256, %s1040_s6, %s360_s9, %s824_s20, %s824_s20, %s825_s21  }
 0x1f0 PF: > { %p608_p8 = scmp.ge.s32.totalorder %s812_s15, 2  ;;  %s388_s27 = sand.u32 1, %s800_s12  }
 0x1f1   : > { %p1101_p13 = scmp.ne.s32.totalorder %s1091_s19, 0  ;;  %s389_s28 = scalar_lea.sflag [#allocation4], %s388_s27 }
 0x1f3   : > { %p600_p3 = pnand %p608_p8, %p1101_p13 }
 0x1f5   : > { %795 = dma.done.wait (!%p600_p3), %s389_s28, 256  }
 0x1f6   : > { %797 = vsyncadd (!%p600_p3), %s389_s28, 4294967040  ;;  %p17_p7 = scmp.ge.s32.totalorder %s949_s5, 6   ;;  %s1102_s12 = smov %s804_s13 }
 0x1f7   : > { %s1103_s13 = smov %s808_s14  ;;  %s1104_s14 = smov %s965_s8 }
 0x1f8   : > { %s1105_s15 = smov %s949_s5  ;;  %19 = sbr.rel (!%p17_p7) target bundleno = 6 (0x6), region = 85 }
 0x1ff   :  { %394 = vsyncpa [#allocation3], 1 }
 0x200   :  { %396 = vsyncpa [#allocation3 + $0x1], 1 }
 0x201   :  { %397 = vsyncpa [#allocation6], 1 }
 0x202   :  { %398 = vsyncpa [#allocation4], 1 }
 0x203   :  { %400 = vsyncpa [#allocation4 + $0x1], 1 }

</bundles_post_ra>
